<compile_context>
chip_gen: v7x
topology: tpu7x:2x2x1
jax: 0.10.0
libtpu: 0.0.40
codegen_flags: <defaults>
</compile_context>

<pallas_src>
import functools

import jax
import jax.numpy as jnp
from jax.experimental import pallas as pl
from jax.experimental.pallas import tpu as pltpu


def _fused_conv_kernel(p_ref, w_ref, o_ref):
    """Single fused im2col matmul (bias folded in).

    p_ref: (K*K*Cin + 1, col_block)  patches (+ ones row), lane-dense columns
    w_ref: (Cout,       K*K*Cin + 1) reshaped weight (+ bias column)
    o_ref: (Cout,       col_block)   channel-major output slab
    """
    o_ref[...] = jnp.dot(
        w_ref[...], p_ref[...], preferred_element_type=jnp.float32
    ).astype(o_ref.dtype)


def _pick_col_block(total):
    # Split the flattened-position axis into two lane-dense blocks when
    # possible so both v7x TensorCores get work; on single-TC chips the extra
    # grid step is negligible.  Fall back to a single block otherwise.
    half = total // 2
    if total % 2 == 0 and half % 128 == 0:
        return half
    return total


@functools.partial(jax.jit, static_argnames=("pad",))
def conv2d_batch_ensemble_forward(x, weight_hwio, bias, pad=1):
    """x: (E, N, Cin, H, W) f32 -> (E, N, Cout, H, W) f32 (shared weights)."""
    E, N, Cin, H, W = x.shape
    K = weight_hwio.shape[0]
    Cout = weight_hwio.shape[3]
    total = E * N * H * W

    # ---- glue (plain JAX / XLA): zero-pad + im2col ------------------------
    x_pad = jnp.pad(x, ((0, 0), (0, 0), (0, 0), (pad, pad), (pad, pad)))
    cols = []
    for kh in range(K):
        for kw in range(K):
            cols.append(x_pad[:, :, :, kh:kh + H, kw:kw + W])   # (E,N,Cin,H,W)
    patches = jnp.stack(cols, axis=0)                           # (K*K,E,N,Cin,H,W)
    patches = jnp.transpose(patches, (0, 3, 1, 2, 4, 5))        # (K*K,Cin,E,N,H,W)
    patches = patches.reshape(K * K * Cin, total)
    # Fold bias into the matmul: ones row on the patches, bias column on W.
    patches_aug = jnp.concatenate(
        [patches, jnp.ones((1, total), patches.dtype)], axis=0)      # (KKC+1, total)
    w2d = weight_hwio.reshape(K * K * Cin, Cout).T                   # (Cout, KKC)
    w_aug = jnp.concatenate([w2d, bias.reshape(Cout, 1)], axis=1)    # (Cout, KKC+1)

    KKC1 = K * K * Cin + 1
    col_block = _pick_col_block(total)
    grid = (total // col_block,)

    # All blocks are tiny (<< VMEM); no vmem_limit_bytes override needed.  If
    # N/H/W grow, re-size col_block against 2x double-buffering on v7x (64 MiB).
    out2d = pl.pallas_call(
        _fused_conv_kernel,
        out_shape=jax.ShapeDtypeStruct((Cout, total), jnp.float32),
        grid=grid,
        in_specs=[
            pl.BlockSpec((KKC1, col_block), lambda j: (0, j)),
            pl.BlockSpec((Cout, KKC1), lambda j: (0, 0)),
        ],
        out_specs=pl.BlockSpec((Cout, col_block), lambda j: (0, j)),
        compiler_params=pltpu.CompilerParams(
            dimension_semantics=("parallel",),
        ),
    )(patches_aug, w_aug)

    # Channel-major columns are ordered (e, n, h, w): reshape + one small
    # transpose back to the PyTorch (E, N, Cout, H, W) convention.
    out = out2d.reshape(Cout, E, N, H, W)
    return jnp.transpose(out, (1, 2, 0, 3, 4))


def _reference_forward(x, weight_hwio, bias, pad=1):
    """Pure-JAX reference: per-member conv2d (identical weights), then stack."""
    w_oihw = jnp.transpose(weight_hwio, (3, 2, 0, 1))  # OIHW
    def one_member(x_i):
        y = jax.lax.conv_general_dilated(
            x_i, w_oihw, window_strides=(1, 1),
            padding=((pad, pad), (pad, pad)),
            dimension_numbers=("NCHW", "OIHW", "NCHW"),
        )
        return y + bias.reshape(1, -1, 1, 1)
    return jnp.stack([one_member(x[e]) for e in range(x.shape[0])])


if __name__ == "__main__":
    # num_instances (E)=2, batch-per-member N=2, Cin=4, H=W=16, Cout=8,
    # 3x3 conv with padding=1 (same as the previous version).
    E, N, Cin, H, W = 2, 2, 4, 16, 16
    Cout, K = 8, 3

    key = jax.random.PRNGKey(0)
    kx, kw, kb = jax.random.split(key, 3)
    x = jax.random.normal(kx, (E, N, Cin, H, W), dtype=jnp.float32)
    # Single shared parameter set (stacked deepcopies => identical members).
    weight_hwio = (jax.random.normal(kw, (K, K, Cin, Cout), dtype=jnp.float32)
                   * (1.0 / (K * K * Cin) ** 0.5))
    bias = jax.random.normal(kb, (Cout,), dtype=jnp.float32) * 0.1

    out = conv2d_batch_ensemble_forward(x, weight_hwio, bias)
    out = jax.block_until_ready(out)

    ref = _reference_forward(x, weight_hwio, bias)
    assert out.shape == (E, N, Cout, H, W), out.shape
    assert jnp.allclose(out, ref, atol=1e-4, rtol=1e-4), "mismatch vs reference"

    print("KERNEL_OK")
</pallas_src>

<mosaic_0001>
module attributes {stable_mosaic.version = 11 : i64} {
  func.func @_fused_conv_kernel(%arg0: i32, %arg1: memref<37x512xf32, #tpu.memory_space<vmem>>, %arg2: memref<8x37xf32, #tpu.memory_space<vmem>>, %arg3: memref<8x512xf32, #tpu.memory_space<vmem>>) attributes {dimension_semantics = [#tpu.dimension_semantics<parallel>], iteration_bounds = array<i64: 2>, scalar_prefetch = 0 : i64, scratch_operands = 0 : i64, tpu.core_type = #tpu.core_type<tc>, window_params = [{transform_indices = @transform_0, window_bounds = array<i64: 37, 512>}, {pipeline_mode = #tpu.pipeline_mode<synchronous>, transform_indices = @transform_1, window_bounds = array<i64: 8, 37>}, {transform_indices = @transform_2, window_bounds = array<i64: 8, 512>}]} {
    %c0 = arith.constant 0 : index
    %c0_0 = arith.constant 0 : index
    %0 = vector.load %arg2[%c0, %c0_0] : memref<8x37xf32, #tpu.memory_space<vmem>>, vector<8x37xf32>
    %c0_1 = arith.constant 0 : index
    %c0_2 = arith.constant 0 : index
    %1 = vector.load %arg1[%c0_1, %c0_2] : memref<37x512xf32, #tpu.memory_space<vmem>>, vector<37x512xf32>
    %cst = arith.constant dense<0.000000e+00> : vector<8x512xf32>
    %2 = tpu.matmul %0, %1, %cst {dimension_numbers = #tpu.dot_dimension_numbers<[1], [0], [0], [1], [0, 0, 1, 1], [], []>} : vector<8x37xf32>, vector<37x512xf32>, vector<8x512xf32> -> vector<8x512xf32>
    %c0_3 = arith.constant 0 : index
    %c0_4 = arith.constant 0 : index
    %3 = vector.load %arg3[%c0_3, %c0_4] : memref<8x512xf32, #tpu.memory_space<vmem>>, vector<8x512xf32>
    tpu.vector_store %arg3[%c0_3, %c0_4], %2 {strides = array<i32>} : memref<8x512xf32, #tpu.memory_space<vmem>>, vector<8x512xf32>,
    return
  }
  func.func @transform_0(%arg0: i32) -> (i32, i32) {
    %c0_i32 = arith.constant 0 : i32
    %c0_i32_0 = arith.constant 0 : i32
    return %c0_i32, %arg0 : i32, i32
  }
  func.func @transform_1(%arg0: i32) -> (i32, i32) {
    %c0_i32 = arith.constant 0 : i32
    %c0_i32_0 = arith.constant 0 : i32
    %c0_i32_1 = arith.constant 0 : i32
    return %c0_i32, %c0_i32_0 : i32, i32
  }
  func.func @transform_2(%arg0: i32) -> (i32, i32) {
    %c0_i32 = arith.constant 0 : i32
    %c0_i32_0 = arith.constant 0 : i32
    return %c0_i32, %arg0 : i32, i32
  }
}

</mosaic_0001>

<bundles_post_ra>
// kernel: conv2d_batch_ensemble_forward.1
= control target key start
LH: loop header
LB: loop body
LE: loop exit
PB: predicated region body
PF: predicated region fallthrough
CT: control target
= control target key end

     0   :  { %s551_s9 = smov 0   ;;  %s553_s10 = smov 0   ;;  %s672_s0 = inlined_call_operand.vmem [shape: f32[37,1024], index: 0, kind: input, shape index: {}]   ;;  %s673_s1 = inlined_call_operand.vmem [shape: f32[8,37], index: 1, kind: input, shape index: {}]   ;;  %s674_s2 = inlined_call_operand.vmem [shape: f32[8,1024], index: 2, kind: output, shape index: {}]  }
   0x1   :  { %s555_s11 = smov 0  }
   0x2 LB: > { %s450_s12 = sadd.s32 4294967295, %s533_s11   ;;  %s568_s13 = sadd.s32 1, %s533_s11   ;;  %s533_s11 = sphi %s555_s11, %s677_s11   ;;  %s529_s10 = sphi %s553_s10, %s676_s10   ;;  %s525_s9 = sphi %s551_s9, %s675_s9  }
   0x3   : > { %s16_s14 = ssub.s32 %s533_s11, %s568_s13  ;;  %s19_s15 = sadd.s32 1, %s529_s10 }
   0x4   : > { %p17_p0 = scmp.eq.s32.totalorder %s16_s14, 0  ;;  %p26_p1 = scmp.ne.s32.totalorder %s529_s10, %s525_s9 }
   0x5   : > { %p27_p2 = scmp.eq.s32.totalorder %s533_s11, 0  ;;  %p453_p4 = scmp.ge.s32.totalorder %s533_s11, 2 }
   0x6   : > { %s577_s16 = scalar_select %p17_p0, %s529_s10, %s19_s15  }
   0x7   : > { %p28_p3 = por %p27_p2, %p26_p1  ;;  %102 = sbr.rel (%p453_p4) target bundleno = 29 (0x1d), region = 20 }
   0xe   : > { %105 = sbr.rel (!%p28_p3) target bundleno = 29 (0x1d), region = 24  ;;  %s107_s17 = sand.u32 (%p28_p3), 1, %s529_s10  }
   0xf   : > { %s467_s18 = sshll.u32 (%p28_p3), %s533_s11, 5  ;;  %s484_s19 = smul.u32 (%p28_p3), 160, %s107_s17 }
  0x10   : > { %s585_s22 = scalar_lea.vmem (%p28_p3), %s672_s0, %s467_s18 }
  0x11   : > { %v125_v0 = vld [vmem:[%s585_s22] sm:$0xff] (%p28_p3)  ;;  %v127_v1 = vld [vmem:[%s585_s22 + $0x8] sm:$0xff] (%p28_p3)  ;;  %v129_v2 = vld [vmem:[%s585_s22 + $0x10] sm:$0xff] (%p28_p3)  ;;  %s593_s23 = scalar_lea.vmem (%p28_p3), [#allocation2], %s484_s19 }
  0x12   : > { %v131_v3 = vld [vmem:[%s585_s22 + $0x18] sm:$0xff] (%p28_p3)  ;;  %v133_v4 = vld [vmem:[%s585_s22 + $0x40] sm:$0xff] (%p28_p3)  ;;  %v135_v5 = vld [vmem:[%s585_s22 + $0x48] sm:$0xff] (%p28_p3)  ;;  %126 = vst [vmem:[%s593_s23] sm:$0xff] (%p28_p3), %v125_v0 }
  0x13   : > { %128 = vst [vmem:[%s593_s23 + $0x8] sm:$0xff] (%p28_p3), %v127_v1  ;;  %130 = vst [vmem:[%s593_s23 + $0x10] sm:$0xff] (%p28_p3), %v129_v2  ;;  %v137_v6 = vld [vmem:[%s585_s22 + $0x50] sm:$0xff] (%p28_p3)  ;;  %v139_v7 = vld [vmem:[%s585_s22 + $0x58] sm:$0xff] (%p28_p3) }
  0x14   : > { %132 = vst [vmem:[%s593_s23 + $0x18] sm:$0xff] (%p28_p3), %v131_v3  ;;  %134 = vst [vmem:[%s593_s23 + $0x20] sm:$0xff] (%p28_p3), %v133_v4  ;;  %v141_v8 = vld [vmem:[%s585_s22 + $0x80] sm:$0xff] (%p28_p3)  ;;  %v143_v9 = vld [vmem:[%s585_s22 + $0x88] sm:$0xff] (%p28_p3) }
  0x15   : > { %136 = vst [vmem:[%s593_s23 + $0x28] sm:$0xff] %v135_v5  ;;  %138 = vst [vmem:[%s593_s23 + $0x30] sm:$0xff] %v137_v6  ;;  %v145_v10 = vld [vmem:[%s585_s22 + $0x90] sm:$0xff]  ;;  %v147_v11 = vld [vmem:[%s585_s22 + $0x98] sm:$0xff] }
  0x16   : > { %140 = vst [vmem:[%s593_s23 + $0x38] sm:$0xff] %v139_v7  ;;  %142 = vst [vmem:[%s593_s23 + $0x40] sm:$0xff] %v141_v8  ;;  %v149_v12 = vld [vmem:[%s585_s22 + $0xc0] sm:$0xff]  ;;  %v151_v13 = vld [vmem:[%s585_s22 + $0xc8] sm:$0xff] }
  0x17   : > { %144 = vst [vmem:[%s593_s23 + $0x48] sm:$0xff] %v143_v9  ;;  %146 = vst [vmem:[%s593_s23 + $0x50] sm:$0xff] %v145_v10  ;;  %v153_v14 = vld [vmem:[%s585_s22 + $0xd0] sm:$0xff]  ;;  %v155_v15 = vld [vmem:[%s585_s22 + $0xd8] sm:$0xff] }
  0x18   : > { %148 = vst [vmem:[%s593_s23 + $0x58] sm:$0xff] %v147_v11  ;;  %150 = vst [vmem:[%s593_s23 + $0x60] sm:$0xff] %v149_v12  ;;  %v157_v16 = vld [vmem:[%s585_s22 + $0x100] sm:$0xff]  ;;  %v159_v17 = vld [vmem:[%s585_s22 + $0x108] sm:$0xff] }
  0x19   : > { %152 = vst [vmem:[%s593_s23 + $0x68] sm:$0xff] %v151_v13  ;;  %154 = vst [vmem:[%s593_s23 + $0x70] sm:$0xff] %v153_v14  ;;  %v161_v18 = vld [vmem:[%s585_s22 + $0x110] sm:$0xff]  ;;  %v163_v19 = vld [vmem:[%s585_s22 + $0x118] sm:$0xff] }
  0x1a   : > { %156 = vst [vmem:[%s593_s23 + $0x78] sm:$0xff] %v155_v15  ;;  %158 = vst [vmem:[%s593_s23 + $0x80] sm:$0xff] %v157_v16 }
  0x1b   : > { %160 = vst [vmem:[%s593_s23 + $0x88] sm:$0xff] %v159_v17  ;;  %162 = vst [vmem:[%s593_s23 + $0x90] sm:$0xff] %v161_v18 }
  0x1c   : > { %164 = vst [vmem:[%s593_s23 + $0x98] sm:$0xff] %v163_v19 }
  0x1d PF: > { %p456_p5 = scmp.ge.s32.totalorder %s533_s11, 1  ;;  %p169_p6 = scmp.lt.s32.totalorder %s533_s11, 3 }
  0x1f   : > { %p170_p7 = pnand %p456_p5, %p169_p6 }
  0x20   : > { %s176_s24 = sand.u32 (!%p170_p7), 1, %s525_s9   ;;  %v535_v20 = vmov (!%p170_p7), 0.0   ;;  %vm229_vm0 = vcmask (!%p170_p7), 1044480   ;;  %v204_v48 = vld [vmem:[%s673_s1] sm:$0xff] (!%p170_p7)  ;;  %vm225_vm1 = vcmask (!%p170_p7), 302080   ;;  %s457_s29 = sshll.u32 (!%p170_p7), %s450_s12, 2 }
  0x21   : > { %173 = sbr.rel (%p170_p7) target bundleno = 266 (0x10a), region = 47  ;;  %306 = vmatprep.mubr.f32.mxu0 (!%p170_p7), %v535_v20  ;;  %377 = vmatprep.mubr.f32.mxu1 (!%p170_p7), %v535_v20  ;;  %p199_p8 = scmp.lt.s32.totalorder (!%p170_p7), %s457_s29, 7 }
  0x22   : > { %s485_s25 = smul.u32 (!%p170_p7), 160, %s176_s24 }
  0x24   : > { %s632_s26 = scalar_lea.vmem (!%p170_p7), [#allocation2], %s485_s25 }
  0x25   : > { %v206_v21 = vld [vmem:[%s632_s26 + $0x8] sm:$0xff] (!%p170_p7)  ;;  %v205_v23 = vld [vmem:[%s632_s26] sm:$0xff] (!%p170_p7)  ;;  %v208_v26 = vld [vmem:[%s632_s26 + $0x18] sm:$0xff] (!%p170_p7) }
  0x26   : > { %v210_v22 = vld [vmem:[%s632_s26 + $0x28] sm:$0xff] (!%p170_p7)  ;;  %v209_v25 = vld [vmem:[%s632_s26 + $0x20] sm:$0xff] (!%p170_p7)  ;;  %v212_v27 = vld [vmem:[%s632_s26 + $0x38] sm:$0xff] (!%p170_p7) }
  0x27   : > { %v468_v24 = vpack.c.bf16 (!%p170_p7), %v210_v22, %v206_v21  ;;  %v470_v28 = vpack.c.bf16 (!%p170_p7), %v209_v25, %v205_v23  ;;  %v476_v29 = vpack.c.bf16 (!%p170_p7), %v212_v27, %v208_v26  ;;  %v207_v30 = vld [vmem:[%s632_s26 + $0x10] sm:$0xff] (!%p170_p7)  ;;  %v214_v32 = vld [vmem:[%s632_s26 + $0x48] sm:$0xff] (!%p170_p7)  ;;  %v213_v35 = vld [vmem:[%s632_s26 + $0x40] sm:$0xff] (!%p170_p7) }
  0x28   : > { %v211_v31 = vld [vmem:[%s632_s26 + $0x30] sm:$0xff]  ;;  %v218_v34 = vld [vmem:[%s632_s26 + $0x68] sm:$0xff]  ;;  %v217_v36 = vld [vmem:[%s632_s26 + $0x60] sm:$0xff]  ;;  %s679_s29 = smov (!%p199_p8, %s457_s29), 7 }
  0x29   : > { %469 = vmatprep.subr.bf16.mxu0 %v468_v24  ;;  %v478_v33 = vpack.c.bf16 %v211_v31, %v207_v30  ;;  %477 = vmatprep.subr.bf16.mxu1 %v476_v29  ;;  %v472_v37 = vpack.c.bf16 %v218_v34, %v214_v32  ;;  %v474_v38 = vpack.c.bf16 %v217_v36, %v213_v35  ;;  %v216_v39 = vld [vmem:[%s632_s26 + $0x58] sm:$0xff]  ;;  %v215_v41 = vld [vmem:[%s632_s26 + $0x50] sm:$0xff]  ;;  %v222_v45 = vld [vmem:[%s632_s26 + $0x88] sm:$0x1f]  ;;  %s458_s30 = sshll.u32 %s679_s29, 3 }
  0x2a   : > { %471 = vmatpush1.bf16.msra.mxu0 %v470_v28  ;;  %v220_v40 = vld [vmem:[%s632_s26 + $0x78] sm:$0xff]  ;;  %v219_v43 = vld [vmem:[%s632_s26 + $0x70] sm:$0xff]  ;;  %v221_v47 = vld [vmem:[%s632_s26 + $0x80] sm:$0x1f]  ;;  %s202_s5 = scalar_lea.vmem %s674_s2, %s458_s30 }
  0x2b   : > { %479 = vmatpush1.bf16.msra.mxu1 %v478_v33  ;;  %v480_v42 = vpack.c.bf16 %v220_v40, %v216_v39  ;;  %473 = vmatprep.subr.bf16.mxu0 %v472_v37  ;;  %v482_v44 = vpack.c.bf16 %v219_v43, %v215_v41  ;;  %v224_v46 = vld [vmem:[%s632_s26 + $0x98] sm:$0x1f]  ;;  %v223_v49 = vld [vmem:[%s632_s26 + $0x90] sm:$0x1f] }
  0x2d   : > { %481 = vmatprep.subr.bf16.mxu1 %v480_v42 }
  0x2e   : > { %475 = vmatpush1.bf16.msra.mxu0 %v474_v38 }
  0x2f   : > { %483 = vmatpush1.bf16.msra.mxu1 %v482_v44  ;;  %459 = vmatprep.subr.msk.mxu0 %vm229_vm0, %v222_v45 }
  0x30   : > { %462 = vmatprep.subr.msk.mxu1 %vm229_vm0, %v224_v46 }
  0x32   : > { %460 = vmatpush1.msk.msra.mxu0 %vm229_vm0, %v221_v47 }
  0x33   : > { %461 = vmatmul.mubr.msk.f32.vlgmr.msra.gmra.mrb[0].mxu0 %vm225_vm1, %v204_v48  ;;  %463 = vmatpush1.msk.msra.mxu1 %vm229_vm0, %v223_v49 }
  0x34   : > { %464 = vmatmul.mubr.msk.f32.vlgmr.msra.gmra.mrb[0].mxu1 %vm225_vm1, %v204_v48 }
 0x106   : > { %v308_v50 = vpop.f32.mrb[0].mxu0 }
 0x107   : > { %384 = vst [vmem:[%s202_s5] sm:$0xff] %v308_v50  ;;  %v310_v51 = vpop.f32.mrb[1].mxu0  ;;  %v379_v52 = vpop.f32.mrb[0].mxu1 }
 0x108   : > { %385 = vst [vmem:[%s202_s5 + $0x8] sm:$0xff] %v310_v51  ;;  %v381_v53 = vpop.f32.mrb[1].mxu1  ;;  %386 = vst [vmem:[%s202_s5 + $0x10] sm:$0xff] %v379_v52 }
 0x109   : > { %387 = vst [vmem:[%s202_s5 + $0x18] sm:$0xff] %v381_v53 }
 0x10a PF: > { %p9_p9 = scmp.ge.s32.totalorder %s568_s13, 4   ;;  %s675_s9 = smov %s529_s10 }
 0x10b   : > { %s676_s10 = smov %s577_s16  ;;  %s677_s11 = smov %s568_s13 }
 0x10c   :  { %11 = sbr.rel (!%p9_p9) target bundleno = 2 (0x2), region = 86 }

</bundles_post_ra>
